<compile_context>
chip_gen: v6e
topology: v6e:2x2x1
jax: 0.10.0
libtpu: 0.0.40
codegen_flags: <defaults>
</compile_context>

<pallas_src>
import jax
import jax.numpy as jnp
from jax.experimental import pallas as pl
from jax.experimental.pallas import tpu as pltpu


def setup_2d(img_size: int, num_tokens: int):
    assert int(num_tokens ** 0.5) ** 2 == num_tokens, "num_patches must be a perfect square"
    img = (img_size, img_size)
    grid = (int(num_tokens ** 0.5), int(num_tokens ** 0.5))
    if grid[0] <= img[0]:
        assert grid[1] <= img[1]
        patch = ((img[0] - 1) // grid[0] + 1, (img[1] - 1) // grid[1] + 1)
        pad = (patch[0] * grid[0] - img[0], patch[1] * grid[1] - img[1])
    else:
        patch = (1, 1)
        pad = (grid[0] - img[0], grid[1] - img[1])
    return img, grid, patch, pad


def _round_up(a: int, b: int) -> int:
    return ((a + b - 1) // b) * b


def _choose_tiles(M, C, N_pad, in_itemsize, out_itemsize, sub):
    """Pick (tm, tn) so double-buffered x/out tiles + resident weight stay
    well under the smallest scoped-VMEM default across v5e/v6e/v7x."""
    budget = 12 * 1024 * 1024
    # N tile: whole (lane-dense-padded) N if it fits, else halve in 128-multiples.
    tn = N_pad
    while 2 * C * tn * in_itemsize > budget // 2 and tn > 128:
        tn = _round_up(tn // 2, 128)
    # M tile: up to 512 rows (multiple of sublane granularity / MXU edge).
    tm = min(512, _round_up(M, sub))
    tm = _round_up(tm, sub)
    while True:
        per_step = (2 * (tm * C * in_itemsize + tm * tn * out_itemsize)
                    + 2 * (C * tn * in_itemsize + tn * 4))
        if per_step <= budget or tm <= sub:
            break
        tm = max(sub, _round_up(tm // 2, sub))
    return tm, tn


def _proj_kernel(x_ref, w_ref, b_ref, o_ref):
    # x_ref: (tm, C), w_ref: (C, tn), b_ref: (1, tn), o_ref: (tm, tn)
    acc = jnp.dot(x_ref[...], w_ref[...], preferred_element_type=jnp.float32)
    o_ref[...] = (acc + b_ref[...]).astype(o_ref.dtype)


def order2_conv_output_proj(x, weight, bias, img_size: int, num_tokens: int,
                            compute_dtype=None):
    """x: (B, L, C) tokens.  weight: (C, O, ph, pw) (ConvTranspose2d layout).
    bias: (O,).  Returns (B, H, W, O) == PyTorch output.permute(0,2,3,1).
    compute_dtype: optional (e.g. jnp.bfloat16) dtype for the MXU operands;
    accumulation stays f32, output dtype stays x.dtype."""
    B, L, C = x.shape
    assert L == num_tokens, "Input sequence length doesn't match model."
    _, grid_size, patch_size, pad_size = setup_2d(img_size, num_tokens)
    gh, gw = grid_size
    ph, pw = patch_size
    O = weight.shape[1]
    N = ph * pw * O
    M = B * L
    out_dtype = x.dtype

    cdtype = jnp.dtype(compute_dtype) if compute_dtype is not None else jnp.dtype(x.dtype)

    # Column order (ph, pw, O): lane dim is O after the glue reshape, so the
    # post-kernel NHWC permute is only a middle-axis swap.
    wmat = jnp.transpose(weight, (0, 2, 3, 1)).reshape(C, N).astype(cdtype)
    bflat = jnp.tile(bias.astype(jnp.float32), ph * pw)[None, :]      # (1, N), f32
    x2d = x.reshape(M, C).astype(cdtype)

    # Lane-dense output: pad N to a multiple of 128 (zero columns, cropped below).
    N_pad = _round_up(N, 128)
    if N_pad != N:
        wmat = jnp.pad(wmat, ((0, 0), (0, N_pad - N)))
        bflat = jnp.pad(bflat, ((0, 0), (0, N_pad - N)))

    sub = 16 if cdtype == jnp.bfloat16 else 8
    in_itemsize = cdtype.itemsize
    out_itemsize = jnp.dtype(out_dtype).itemsize
    tm, tn = _choose_tiles(M, C, N_pad, in_itemsize, out_itemsize, sub)

    # Pad M (token rows) up to a tile multiple instead of asserting divisibility.
    M_pad = _round_up(M, tm)
    if M_pad != M:
        x2d = jnp.pad(x2d, ((0, M_pad - M), (0, 0)))

    grid = (M_pad // tm, N_pad // tn)
    cost = pl.CostEstimate(
        flops=2 * M_pad * C * N_pad,
        transcendentals=0,
        bytes_accessed=(M_pad * C * in_itemsize
                        + C * N_pad * in_itemsize
                        + M_pad * N_pad * out_itemsize),
    )

    out2d = pl.pallas_call(
        _proj_kernel,
        out_shape=jax.ShapeDtypeStruct((M_pad, N_pad), out_dtype),
        grid_spec=pltpu.PrefetchScalarGridSpec(
            num_scalar_prefetch=0,
            grid=grid,
            in_specs=[
                pl.BlockSpec((tm, C), lambda i, j: (i, 0)),
                pl.BlockSpec((C, tn), lambda i, j: (0, j)),
                pl.BlockSpec((1, tn), lambda i, j: (0, j)),
            ],
            out_specs=pl.BlockSpec((tm, tn), lambda i, j: (i, j)),
        ),
        compiler_params=pltpu.CompilerParams(
            dimension_semantics=("parallel", "parallel")),
        cost_estimate=cost,
    )(x2d, wmat, bflat)

    out2d = out2d[:M, :N]

    # Glue: (B*L, ph*pw*O) -> (B, gh, gw, ph, pw, O) -> (B, gh, ph, gw, pw, O)
    # -> (B, gh*ph, gw*pw, O), then crop the transpose-conv padding.
    y = out2d.reshape(B, gh, gw, ph, pw, O)
    y = jnp.transpose(y, (0, 1, 3, 2, 4, 5)).reshape(B, gh * ph, gw * pw, O)
    # PyTorch uses x[:, :, :-pad_h, :-pad_w]; requires pad > 0 (same constraint as ref).
    assert pad_size[0] > 0 and pad_size[1] > 0
    H = gh * ph - pad_size[0]
    W = gw * pw - pad_size[1]
    # norm_layer=None -> nn.Identity(), nothing to apply.
    return y[:, :H, :W, :]


def _reference(x, weight, bias, img_size, num_tokens):
    """Pure-JAX f32 reference of the ConvTranspose2d (stride==kernel_size) path."""
    B, L, C = x.shape
    _, grid_size, patch_size, pad_size = setup_2d(img_size, num_tokens)
    gh, gw = grid_size
    ph, pw = patch_size
    O = weight.shape[1]
    # out[b, l, o, i, j] = sum_c x[b, l, c] * W[c, o, i, j] + bias[o]
    y = jnp.einsum("blc,coij->bloij", x, weight) + bias[None, None, :, None, None]
    y = y.reshape(B, gh, gw, O, ph, pw)
    y = jnp.transpose(y, (0, 1, 4, 2, 5, 3)).reshape(B, gh * ph, gw * pw, O)
    H = gh * ph - pad_size[0]
    W = gw * pw - pad_size[1]
    return y[:, :H, :W, :]


if __name__ == "__main__":
    # Module config (small): img_size=15, out_chans=4, num_tokens=16, embed_dim=32
    # -> grid_size=(4,4), patch_size=(4,4), pad_size=(1,1), output (B, 15, 15, 4)
    img_size = 15
    out_chans = 4
    num_tokens = 16
    embed_dim = 32
    B = 2

    _, grid_size, patch_size, pad_size = setup_2d(img_size, num_tokens)
    ph, pw = patch_size

    key = jax.random.PRNGKey(0)
    kx, kw, kb = jax.random.split(key, 3)
    x = jax.random.normal(kx, (B, num_tokens, embed_dim), dtype=jnp.float32)
    # ConvTranspose2d weight shape: (in_channels=embed_dim, out_channels, kh, kw)
    fan = embed_dim * ph * pw
    weight = jax.random.normal(kw, (embed_dim, out_chans, ph, pw), dtype=jnp.float32) / jnp.sqrt(fan)
    bias = jax.random.normal(kb, (out_chans,), dtype=jnp.float32) * 0.01

    ref = _reference(x, weight, bias, img_size, num_tokens)

    # f32 MXU path (bit-exact layout vs. PyTorch semantics).
    out = order2_conv_output_proj(x, weight, bias, img_size, num_tokens)
    out = jax.block_until_ready(out)
    assert out.shape == (B, img_size, img_size, out_chans), out.shape
    assert jnp.allclose(out, ref, atol=1e-4, rtol=1e-4), "f32 mismatch vs reference"

    # bf16-input path (f32 accumulation) for the MXU-native rate; looser tolerance.
    out_bf16 = order2_conv_output_proj(x, weight, bias, img_size, num_tokens,
                                       compute_dtype=jnp.bfloat16)
    out_bf16 = jax.block_until_ready(out_bf16)
    assert out_bf16.shape == (B, img_size, img_size, out_chans), out_bf16.shape
    assert jnp.allclose(out_bf16, ref, atol=3e-2, rtol=3e-2), "bf16 mismatch vs reference"

    print("KERNEL_OK")
</pallas_src>

<mosaic_0001>
module attributes {stable_mosaic.version = 11 : i64} {
  func.func @_proj_kernel(%arg0: i32, %arg1: i32, %arg2: memref<32x32xf32, #tpu.memory_space<vmem>>, %arg3: memref<32x128xf32, #tpu.memory_space<vmem>>, %arg4: memref<1x128xf32, #tpu.memory_space<vmem>>, %arg5: memref<32x128xf32, #tpu.memory_space<vmem>>) attributes {dimension_semantics = [#tpu.dimension_semantics<parallel>, #tpu.dimension_semantics<parallel>], iteration_bounds = array<i64: 1, 1>, scalar_prefetch = 0 : i64, scratch_operands = 0 : i64, tpu.core_type = #tpu.core_type<tc>, window_params = [{transform_indices = @transform_0, window_bounds = array<i64: 32, 32>}, {transform_indices = @transform_1, window_bounds = array<i64: 32, 128>}, {transform_indices = @transform_2, window_bounds = array<i64: 1, 128>}, {transform_indices = @transform_3, window_bounds = array<i64: 32, 128>}]} {
    %c0 = arith.constant 0 : index
    %c0_0 = arith.constant 0 : index
    %0 = vector.load %arg2[%c0, %c0_0] : memref<32x32xf32, #tpu.memory_space<vmem>>, vector<32x32xf32>
    %c0_1 = arith.constant 0 : index
    %c0_2 = arith.constant 0 : index
    %1 = vector.load %arg3[%c0_1, %c0_2] : memref<32x128xf32, #tpu.memory_space<vmem>>, vector<32x128xf32>
    %cst = arith.constant dense<0.000000e+00> : vector<32x128xf32>
    %2 = tpu.matmul %0, %1, %cst {dimension_numbers = #tpu.dot_dimension_numbers<[1], [0], [0], [1], [0, 0, 1, 1], [], []>} : vector<32x32xf32>, vector<32x128xf32>, vector<32x128xf32> -> vector<32x128xf32>
    %c0_3 = arith.constant 0 : index
    %c0_4 = arith.constant 0 : index
    %3 = vector.load %arg4[%c0_3, %c0_4] : memref<1x128xf32, #tpu.memory_space<vmem>>, vector<1x128xf32>
    %4 = vector.broadcast %3 : vector<1x128xf32> to vector<32x128xf32>
    %5 = arith.addf %2, %4 : vector<32x128xf32>
    %c0_5 = arith.constant 0 : index
    %c0_6 = arith.constant 0 : index
    %6 = vector.load %arg5[%c0_5, %c0_6] : memref<32x128xf32, #tpu.memory_space<vmem>>, vector<32x128xf32>
    tpu.vector_store %arg5[%c0_5, %c0_6], %5 {strides = array<i32>} : memref<32x128xf32, #tpu.memory_space<vmem>>, vector<32x128xf32>,
    return
  }
  func.func @transform_0(%arg0: i32, %arg1: i32) -> (i32, i32) {
    %c0_i32 = arith.constant 0 : i32
    %c0_i32_0 = arith.constant 0 : i32
    return %arg0, %c0_i32 : i32, i32
  }
  func.func @transform_1(%arg0: i32, %arg1: i32) -> (i32, i32) {
    %c0_i32 = arith.constant 0 : i32
    %c0_i32_0 = arith.constant 0 : i32
    return %c0_i32, %arg1 : i32, i32
  }
  func.func @transform_2(%arg0: i32, %arg1: i32) -> (i32, i32) {
    %c0_i32 = arith.constant 0 : i32
    %c0_i32_0 = arith.constant 0 : i32
    return %c0_i32, %arg1 : i32, i32
  }
  func.func @transform_3(%arg0: i32, %arg1: i32) -> (i32, i32) {
    %c0_i32 = arith.constant 0 : i32
    return %arg0, %arg1 : i32, i32
  }
}

</mosaic_0001>

<bundles_post_ra>
// kernel: tpu_custom_call.1
= control target key start
LH: loop header
LB: loop body
LE: loop exit
PB: predicated region body
PF: predicated region fallthrough
CT: control target
= control target key end

     0   :  { %8 = vsyncpa [#allocation3], 0  ;;  %s330_s0 = inlined_call_operand.hbm [shape: f32[32,32], index: 0, kind: input, shape index: {}]   ;;  %s331_s1 = inlined_call_operand.hbm [shape: f32[32,128], index: 1, kind: input, shape index: {}]   ;;  %s332_s2 = inlined_call_operand.vmem [shape: f32[1,128], index: 2, kind: input, shape index: {}]   ;;  %s333_s3 = inlined_call_operand.hbm [shape: f32[32,128], index: 3, kind: output, shape index: {}]  }
   0x1   :  { %9 = vsyncpa [#allocation6], 0 }
   0x2   :  { %10 = vsyncpa [#allocation4], 0  ;;  %s284_s12 = smov [#allocation2]  }
   0x3   :  { %s16_s13 = sshll.u32 %s284_s12, 4  ;;  %s17_s13 = int_to_ptr.vmem [resolvable:$true] %s16_s13 }
   0x4   :  { %s226_s14 = scalar_lea.vmem %s17_s13, 512  ;;  %p231_p1 = scmp.lt.s32.totalorder %s17_s13, %s17_s13 }
   0x5   :  { %p227_p0 = scmp.ne.s32.totalorder %s17_s13, %s226_s14  ;;  %p232_p2 = scmp.lt.s32.totalorder %s226_s14, %s226_s14 }
   0x7   :  { %p233_p3 = por %p232_p2, %p231_p1 }
   0x9   :  { %p234_p4 = pnand %p233_p3, %p227_p0 }
   0xb   :  { %237 = shalt.err (!%p234_p4)
}
   0xc   :  { %s285_s15 = smov 128   ;;  %s286_s16 = smov 8  }
   0xd   :  { %22 = dma.hbm_to_vmem [thread:$0]  %s330_s0, 512, %s17_s13, [#allocation3], %s285_s15, %s285_s15, %s286_s16  }
   0xe   :  { %s287_s19 = smov [#allocation5]  }
   0xf   :  { %s28_s20 = sshll.u32 %s287_s19, 4  ;;  %s29_s20 = int_to_ptr.vmem [resolvable:$true] %s28_s20 }
  0x10   :  { %s246_s21 = scalar_lea.vmem %s29_s20, 512  ;;  %p251_p6 = scmp.lt.s32.totalorder %s29_s20, %s29_s20 }
  0x11   :  { %p247_p5 = scmp.ne.s32.totalorder %s29_s20, %s246_s21  ;;  %p252_p7 = scmp.lt.s32.totalorder %s246_s21, %s246_s21 }
  0x13   :  { %p253_p8 = por %p252_p7, %p251_p6 }
  0x15   :  { %p254_p9 = pnand %p253_p8, %p247_p5 }
  0x17   :  { %257 = shalt.err (!%p254_p9)
}
  0x18   :  { %34 = dma.hbm_to_vmem [thread:$0]  %s331_s1, 512, %s29_s20, [#allocation6], %s285_s15, %s285_s15, %s286_s16  }
  0x19   :  { %278 = dma.done.wait [#allocation3], 512  }
  0x1a   :  { %279 = vsyncadd [#allocation3], 4294966784 }
  0x1b   :  { %280 = dma.done.wait [#allocation6], 512  }
  0x1c   :  { %281 = vsyncadd [#allocation6], 4294966784  ;;  %v50_v0 = vld [vmem:[#allocation5 + $0x18] sm:$0xff]  ;;  %v49_v1 = vld [vmem:[#allocation5 + $0x10] sm:$0xff]  ;;  %vm58_vm0 = vcmask 261120   ;;  %s288_s24 = smov [#allocation7]  }
  0x1d   :  { %191 = vmatprep.subr.mxu0 %v50_v0  ;;  %205 = vmatprep.subr.mxu1 %v50_v0  ;;  %v48_v2 = vld [vmem:[#allocation5 + $0x8] sm:$0xff]  ;;  %v47_v3 = vld [vmem:[#allocation5] sm:$0xff]  ;;  %v45_v5 = vld [vmem:[#allocation2 + $0x10] sm:$0xff]  ;;  %s165_s25 = sshll.u32 %s288_s24, 4  ;;  %s166_s25 = int_to_ptr.vmem [resolvable:$true] %s165_s25 }
  0x1e   :  { %192 = vmatpush3.msra.mxu0 %v50_v0  ;;  %209 = vmatpush3.msra.mxu1 %v50_v0  ;;  %v43_v4 = vld [vmem:[#allocation2] sm:$0xff]  ;;  %v44_v6 = vld [vmem:[#allocation2 + $0x8] sm:$0xff]  ;;  %v46_v7 = vld [vmem:[#allocation2 + $0x18] sm:$0xff]  ;;  %s258_s26 = scalar_lea.vmem %s166_s25, 512  ;;  %p263_p11 = scmp.lt.s32.totalorder %s166_s25, %s166_s25 }
  0x1f   :  { %193 = vmatprep.subr.mxu0 %v49_v1  ;;  %206 = vmatprep.subr.mxu1 %v49_v1  ;;  %v178_v8 = vld [vmem:[%s332_s2] ss:$0 sm:$0xff]  ;;  %p259_p10 = scmp.ne.s32.totalorder %s166_s25, %s258_s26  ;;  %p264_p12 = scmp.lt.s32.totalorder %s258_s26, %s258_s26 }
  0x20   :  { %194 = vmatpush3.msra.mxu0 %v49_v1  ;;  %210 = vmatpush3.msra.mxu1 %v49_v1 }
  0x21   :  { %195 = vmatprep.subr.mxu0 %v48_v2  ;;  %207 = vmatprep.subr.mxu1 %v48_v2  ;;  %p265_p13 = por %p264_p12, %p263_p11 }
  0x22   :  { %196 = vmatpush3.msra.mxu0 %v48_v2  ;;  %211 = vmatpush3.msra.mxu1 %v48_v2 }
  0x23   :  { %197 = vmatprep.subr.mxu0 %v47_v3  ;;  %208 = vmatprep.subr.mxu1 %v47_v3  ;;  %p266_p0 = pnand %p265_p13, %p259_p10 }
  0x24   :  { %198 = vmatpush3.msra.mxu0 %v47_v3  ;;  %212 = vmatpush3.msra.mxu1 %v47_v3 }
  0x25   :  { %199 = vmatprep.mubr.msk.f32.mxu0 %vm58_vm0, %v43_v4  ;;  %202 = vmatprep.mubr.msk.f32.mxu1 %vm58_vm0, %v45_v5 }
  0x26   :  { %200 = vmatmul.mubr.msk.f32.vlgmr.msra.gmra.mxu0 %vm58_vm0, %v44_v6  ;;  %203 = vmatmul.mubr.msk.f32.vlgmr.msra.gmra.mxu1 %vm58_vm0, %v46_v7 }
  0xe6   :  { %v201_v9 = vpop.f32.mrf.mxu0  ;;  %v204_v10 = vpop.f32.mrf.mxu1 }
  0xe7   :  { %v143_v11 = vadd.f32 %v201_v9, %v178_v8  ;;  %v153_v12 = vadd.f32 %v204_v10, %v178_v8 }
  0xe8   :  { %v137_v13 = vpop.f32.mrf.mxu0  ;;  %v147_v14 = vpop.f32.mrf.mxu1 }
  0xe9   :  { %157 = vst [vmem:[#allocation7 + $0x8] sm:$0xff] %v143_v11  ;;  %159 = vst [vmem:[#allocation7 + $0x18] sm:$0xff] %v153_v12  ;;  %v138_v15 = vadd.f32 %v178_v8, %v137_v13  ;;  %v148_v16 = vadd.f32 %v178_v8, %v147_v14 }
  0xeb   :  { %156 = vst [vmem:[#allocation7] sm:$0xff] %v138_v15  ;;  %158 = vst [vmem:[#allocation7 + $0x10] sm:$0xff] %v148_v16 }
  0xec   :  { %269 = shalt.err (!%p266_p0)
}
  0xed   :  { %171 = dma.vmem_to_hbm [thread:$0]  %s166_s25, 512, %s333_s3, [#allocation4], %s285_s15, %s285_s15, %s286_s16  }
  0xee   :  { %282 = dma.done.wait [#allocation4], 512  }
  0xef   :  { %283 = vsyncadd [#allocation4], 4294966784 }
  0xf0   :  { %175 = vsyncpa [#allocation3], 1 }
  0xf1   :  { %176 = vsyncpa [#allocation6], 1 }
  0xf2   :  { %177 = vsyncpa [#allocation4], 1 }

</bundles_post_ra>
